<compile_context>
chip_gen: v7x
topology: tpu7x:2x2x1
jax: 0.10.0
libtpu: 0.0.40
codegen_flags: <defaults>
</compile_context>

<pallas_src>
import functools
import math

import jax
import jax.numpy as jnp
from jax import lax
from jax.experimental import pallas as pl
from jax.experimental.pallas import tpu as pltpu


# ----------------------------------------------------------------------------
# Pallas kernel: two half-basis matmuls per (batch row, frame tile)
# ----------------------------------------------------------------------------
def _mdct_kernel(halves_ref, b0_ref, b1_ref, out_ref):
    # halves_ref : (K_pad+1, hop)  padded audio as half-frames (resident per b)
    # b0_ref     : (F, hop)        windowed basis, first half of each frame
    # b1_ref     : (F, hop)        windowed basis, second half of each frame
    # out_ref    : (F, TK) f32     transposed output tile (freq x frames)
    tk = out_ref.shape[-1]
    kt = pl.program_id(1)
    start = kt * tk
    if tk % 8 == 0:
        start = pl.multiple_of(start, 8)

    # frame k = [half_k ; half_{k+1}] -> assemble operands straight from the
    # non-duplicated half-frame buffer (no 2x framed copy / concat in HBM).
    h0 = halves_ref[pl.ds(start, tk), :]        # (TK, hop) first halves
    h1 = halves_ref[pl.ds(start + 1, tk), :]    # (TK, hop) second halves

    dn = (((1,), (1,)), ((), ()))               # contract the hop axes -> (F, TK)
    acc = lax.dot_general(b0_ref[...], h0, dn, preferred_element_type=jnp.float32)
    acc = acc + lax.dot_general(b1_ref[...], h1, dn,
                                preferred_element_type=jnp.float32)
    out_ref[...] = acc.astype(out_ref.dtype)


# ----------------------------------------------------------------------------
# Wrapper around pallas_call
# ----------------------------------------------------------------------------
def _vmem_limit_bytes():
    # ~half of physical VMEM: 64 MiB on v5e/v6e (128 MiB phys), 32 MiB on v7x.
    try:
        cap = int(pltpu.get_tpu_info().vmem_capacity_bytes)
    except Exception:
        cap = 64 << 20
    return int(max(32 << 20, min(cap // 2, 64 << 20)))


def _choose_tk(K):
    # Lane axis of the output tile: full-K for small inputs (single tile, no
    # dead work, full-dim block), otherwise 128-aligned for unmasked stores
    # and full MXU passes; larger tiles once K is big enough to amortize them.
    if K < 128:
        return K
    if K >= 2048:
        return 512
    if K >= 1024:
        return 256
    return 128


def _mdct_pallas(halves, b0t, b1t, K, tk):
    B, n_halves, hop = halves.shape
    F = b0t.shape[0]
    k_pad = n_halves - 1
    kt_steps = k_pad // tk

    def basis_spec(single_buffer):
        if single_buffer:
            # Constant block -> never re-fetched; one buffer saves N*F*4 VMEM.
            return pl.BlockSpec((F, hop), lambda b, kt: (0, 0),
                                pipeline_mode=pl.Buffered(1))
        return pl.BlockSpec((F, hop), lambda b, kt: (0, 0))

    def call(single_buffer):
        return pl.pallas_call(
            _mdct_kernel,
            out_shape=jax.ShapeDtypeStruct((B, F, K), jnp.float32),
            grid=(B, kt_steps),
            in_specs=[
                # Whole half-frame row for batch b stays resident across kt.
                pl.BlockSpec((None, n_halves, hop), lambda b, kt: (b, 0, 0)),
                basis_spec(single_buffer),
                basis_spec(single_buffer),
            ],
            # Transposed output written directly; last tile is partial (clipped).
            out_specs=pl.BlockSpec((None, F, tk), lambda b, kt: (b, 0, kt)),
            compiler_params=pltpu.CompilerParams(
                dimension_semantics=("parallel", "parallel"),
                vmem_limit_bytes=_vmem_limit_bytes(),
            ),
            cost_estimate=pl.CostEstimate(
                flops=4 * B * k_pad * hop * F,
                transcendentals=0,
                bytes_accessed=4 * (B * n_halves * hop + 2 * F * hop + B * F * K),
            ),
        )(halves, b0t, b1t)

    try:
        return call(True)
    except Exception:
        # Fallback if pipeline_mode=pl.Buffered(1) is unsupported in this jax.
        return call(False)


# ----------------------------------------------------------------------------
# Parameters (deterministic, mirrors MDCT.__init__ with vorbis_window)
# ----------------------------------------------------------------------------
def vorbis_window(win_length):
    arg = jnp.arange(win_length, dtype=jnp.float32) + 0.5
    return jnp.sin(jnp.pi / 2.0 *
                   jnp.power(jnp.sin(jnp.pi / win_length * arg), 2.0))


@functools.lru_cache(maxsize=8)
def _mdct_basis_t(win_length):
    # basis_t[m, j] = cos( pi/N * ( j*(1+2m) + (N/2+1)*(m+0.5) ) ), shape (F, N).
    # Integer part of the phase is reduced mod 2N exactly in int32 so fp32 cos
    # stays accurate for large windows (valid for N up to ~16k).
    N = win_length
    F = N // 2
    m = jnp.arange(F, dtype=jnp.int32)[:, None]
    j = jnp.arange(N, dtype=jnp.int32)[None, :]
    ip = (j * (1 + 2 * m) + (N // 2 + 1) * m) % (2 * N)
    phase = (jnp.pi / N) * (ip.astype(jnp.float32) + (N // 2 + 1) * 0.5)
    return jnp.cos(phase)


# ----------------------------------------------------------------------------
# MDCT forward (glue + Pallas hot path)
# ----------------------------------------------------------------------------
def mdct_forward(waveform, window, center=True, compute_dtype=jnp.float32):
    waveform = waveform.astype(jnp.float32)
    shape = waveform.shape
    n_samples = shape[-1]
    win_length = window.shape[-1]
    hop = win_length // 2
    F = win_length // 2

    wav2d = waveform.reshape(-1, n_samples)
    B = wav2d.shape[0]

    n_frames = int(math.ceil(n_samples / hop)) + 1
    if center:
        pad_left = hop
        padded_len = (n_frames + 2) * hop
    else:
        pad_left = 0
        padded_len = n_samples
        if padded_len < win_length:
            raise ValueError("input too short for win_length with center=False")
    K = (padded_len - win_length) // hop + 1          # number of output frames

    tk = _choose_tk(K)
    k_pad = pl.cdiv(K, tk) * tk                       # frames incl. dead tail
    needed = (k_pad + 1) * hop                        # samples covering k_pad frames

    # Single pad (same one center=True needs anyway) + free reshape into
    # non-overlapping half-frames; no duplicated framed array is materialized.
    right = max(0, needed - pad_left - n_samples)
    if pad_left or right:
        wav2d = jnp.pad(wav2d, ((0, 0), (pad_left, right)))
    wav2d = wav2d[:, :needed]
    halves = wav2d.reshape(B, k_pad + 1, hop)

    # Window folded into the (cached) transposed basis; split into the two
    # half-frame contractions used by the kernel.
    basis_t = window.astype(jnp.float32)[None, :] * _mdct_basis_t(win_length)
    b0t = basis_t[:, :hop]
    b1t = basis_t[:, hop:]

    if compute_dtype != jnp.float32:
        # Opt-in reduced-precision operands (fp32 accumulation kept).
        halves = halves.astype(compute_dtype)
        b0t = b0t.astype(compute_dtype)
        b1t = b1t.astype(compute_dtype)

    # TODO(synk): for N >= 4096 on v7x (64 MiB VMEM) the resident basis would
    # need an additional F-axis grid dimension; not implemented here.
    out = _mdct_pallas(halves, b0t, b1t, K, tk)       # (B, F, K) float32
    return out.reshape(shape[:-1] + (F, K))


# ----------------------------------------------------------------------------
# Pure-JAX reference (mirrors the torch complex-FFT implementation)
# ----------------------------------------------------------------------------
def mdct_reference(waveform, window, center=True):
    n_samples = waveform.shape[-1]
    win_length = window.shape[-1]
    hop_length = win_length // 2
    shape = waveform.shape
    wav2d = waveform.reshape(-1, n_samples)
    n_frames = int(math.ceil(n_samples / hop_length)) + 1
    if center:
        wav2d = jnp.pad(
            wav2d, ((0, 0), (hop_length, (n_frames + 1) * hop_length - n_samples))
        )
    pre = jnp.exp(-1j * jnp.pi / win_length * jnp.arange(0, win_length))
    post = jnp.exp(
        -1j * jnp.pi / win_length * (win_length / 2 + 1)
        * jnp.arange(0.5, win_length / 2 + 0.5)
    )
    padded_len = wav2d.shape[-1]
    K = (padded_len - win_length) // hop_length + 1
    idx = jnp.arange(K)[:, None] * hop_length + jnp.arange(win_length)[None, :]
    spec = wav2d[:, idx]                                     # (B, K, N)
    spec = spec * window
    spec = spec * pre
    spec = jnp.fft.fft(spec, axis=-1)
    spec = spec[..., : win_length // 2] * post               # (B, K, F)
    spec = jnp.real(jnp.swapaxes(spec, -1, -2))              # (B, F, K)
    return spec.reshape(shape[:-1] + spec.shape[-2:]).astype(jnp.float32)


if __name__ == "__main__":
    key = jax.random.PRNGKey(0)
    batch, channels, n_samples = 2, 4, 64
    win_length = 16

    waveform = jax.random.normal(
        key, (batch, channels, n_samples), dtype=jnp.float32
    )
    window = vorbis_window(win_length)

    out = mdct_forward(waveform, window, center=True)
    out = jax.block_until_ready(out)

    ref = mdct_reference(waveform, window, center=True)
    expected_shape = (batch, channels, win_length // 2,
                      int(math.ceil(n_samples / (win_length // 2))) + 2)
    assert out.shape == expected_shape, (out.shape, expected_shape)
    assert jnp.allclose(out, ref, atol=1e-4, rtol=1e-4), float(
        jnp.max(jnp.abs(out - ref))
    )

    print("KERNEL_OK")
</pallas_src>

<mosaic_0001>
module attributes {stable_mosaic.version = 11 : i64} {
  func.func @_mdct_kernel(%arg0: i32, %arg1: i32, %arg2: memref<1x11x8xf32, #tpu.memory_space<vmem>>, %arg3: memref<8x8xf32, #tpu.memory_space<vmem>>, %arg4: memref<8x8xf32, #tpu.memory_space<vmem>>, %arg5: memref<1x8x10xf32, #tpu.memory_space<vmem>>) attributes {dimension_semantics = [#tpu.dimension_semantics<parallel>, #tpu.dimension_semantics<parallel>], iteration_bounds = array<i64: 8, 1>, scalar_prefetch = 0 : i64, scratch_operands = 0 : i64, tpu.core_type = #tpu.core_type<tc>, window_params = [{transform_indices = @transform_0, window_bounds = array<i64: 1, 11, 8>}, {pipeline_mode = #tpu.pipeline_mode<synchronous>, transform_indices = @transform_1, window_bounds = array<i64: 8, 8>}, {pipeline_mode = #tpu.pipeline_mode<synchronous>, transform_indices = @transform_2, window_bounds = array<i64: 8, 8>}, {transform_indices = @transform_3, window_bounds = array<i64: 1, 8, 10>}]} {
    %c10_i32 = arith.constant 10 : i32
    %0 = arith.muli %arg1, %c10_i32 : i32
    %c0 = arith.constant 0 : index
    %1 = arith.index_cast %0 : i32 to index
    %c0_0 = arith.constant 0 : index
    %2 = vector.load %arg2[%c0, %1, %c0_0] : memref<1x11x8xf32, #tpu.memory_space<vmem>>, vector<1x10x8xf32>
    %3 = vector.shape_cast %2 : vector<1x10x8xf32> to vector<10x8xf32>
    %c1_i32 = arith.constant 1 : i32
    %4 = arith.addi %0, %c1_i32 : i32
    %c0_1 = arith.constant 0 : index
    %5 = arith.index_cast %4 : i32 to index
    %c0_2 = arith.constant 0 : index
    %6 = vector.load %arg2[%c0_1, %5, %c0_2] : memref<1x11x8xf32, #tpu.memory_space<vmem>>, vector<1x10x8xf32>
    %7 = vector.shape_cast %6 : vector<1x10x8xf32> to vector<10x8xf32>
    %c0_3 = arith.constant 0 : index
    %c0_4 = arith.constant 0 : index
    %8 = vector.load %arg3[%c0_3, %c0_4] : memref<8x8xf32, #tpu.memory_space<vmem>>, vector<8x8xf32>
    %cst = arith.constant dense<0.000000e+00> : vector<8x10xf32>
    %9 = tpu.matmul %8, %3, %cst {dimension_numbers = #tpu.dot_dimension_numbers<[1], [1], [0], [0], [0, 0, 1, 0], [], []>} : vector<8x8xf32>, vector<10x8xf32>, vector<8x10xf32> -> vector<8x10xf32>
    %c0_5 = arith.constant 0 : index
    %c0_6 = arith.constant 0 : index
    %10 = vector.load %arg4[%c0_5, %c0_6] : memref<8x8xf32, #tpu.memory_space<vmem>>, vector<8x8xf32>
    %cst_7 = arith.constant dense<0.000000e+00> : vector<8x10xf32>
    %11 = tpu.matmul %10, %7, %cst_7 {dimension_numbers = #tpu.dot_dimension_numbers<[1], [1], [0], [0], [0, 0, 1, 0], [], []>} : vector<8x8xf32>, vector<10x8xf32>, vector<8x10xf32> -> vector<8x10xf32>
    %12 = arith.addf %9, %11 : vector<8x10xf32>
    %c0_8 = arith.constant 0 : index
    %c0_9 = arith.constant 0 : index
    %c0_10 = arith.constant 0 : index
    %13 = vector.load %arg5[%c0_8, %c0_9, %c0_10] : memref<1x8x10xf32, #tpu.memory_space<vmem>>, vector<1x8x10xf32>
    %14 = vector.shape_cast %13 : vector<1x8x10xf32> to vector<8x10xf32>
    %15 = vector.shape_cast %12 : vector<8x10xf32> to vector<1x8x10xf32>
    tpu.vector_store %arg5[%c0_8, %c0_9, %c0_10], %15 {strides = array<i32>} : memref<1x8x10xf32, #tpu.memory_space<vmem>>, vector<1x8x10xf32>,
    return
  }
  func.func @transform_0(%arg0: i32, %arg1: i32) -> (i32, i32, i32) {
    %c0_i32 = arith.constant 0 : i32
    %c0_i32_0 = arith.constant 0 : i32
    %c0_i32_1 = arith.constant 0 : i32
    return %arg0, %c0_i32, %c0_i32_0 : i32, i32, i32
  }
  func.func @transform_1(%arg0: i32, %arg1: i32) -> (i32, i32) {
    %c0_i32 = arith.constant 0 : i32
    %c0_i32_0 = arith.constant 0 : i32
    %c0_i32_1 = arith.constant 0 : i32
    return %c0_i32, %c0_i32_0 : i32, i32
  }
  func.func @transform_2(%arg0: i32, %arg1: i32) -> (i32, i32) {
    %c0_i32 = arith.constant 0 : i32
    %c0_i32_0 = arith.constant 0 : i32
    %c0_i32_1 = arith.constant 0 : i32
    return %c0_i32, %c0_i32_0 : i32, i32
  }
  func.func @transform_3(%arg0: i32, %arg1: i32) -> (i32, i32, i32) {
    %c0_i32 = arith.constant 0 : i32
    %c0_i32_0 = arith.constant 0 : i32
    return %arg0, %c0_i32, %arg1 : i32, i32, i32
  }
}

module attributes {stable_mosaic.version = 11 : i64} {
  func.func @_mdct_kernel(%arg0: i32, %arg1: i32, %arg2: memref<1x11x8xf32, #tpu.memory_space<vmem>>, %arg3: memref<8x8xf32, #tpu.memory_space<vmem>>, %arg4: memref<8x8xf32, #tpu.memory_space<vmem>>, %arg5: memref<1x8x10xf32, #tpu.memory_space<vmem>>) attributes {dimension_semantics = [#tpu.dimension_semantics<parallel>, #tpu.dimension_semantics<parallel>], iteration_bounds = array<i64: 8, 1>, scalar_prefetch = 0 : i64, scratch_operands = 0 : i64, tpu.core_type = #tpu.core_type<tc>, window_params = [{transform_indices = @transform_0, window_bounds = array<i64: 1, 11, 8>}, {pipeline_mode = #tpu.pipeline_mode<synchronous>, transform_indices = @transform_1, window_bounds = array<i64: 8, 8>}, {pipeline_mode = #tpu.pipeline_mode<synchronous>, transform_indices = @transform_2, window_bounds = array<i64: 8, 8>}, {transform_indices = @transform_3, window_bounds = array<i64: 1, 8, 10>}]} {
    %c10_i32 = arith.constant 10 : i32
    %0 = arith.muli %arg1, %c10_i32 : i32
    %c0 = arith.constant 0 : index
    %1 = arith.index_cast %0 : i32 to index
    %c0_0 = arith.constant 0 : index
    %2 = vector.load %arg2[%c0, %1, %c0_0] : memref<1x11x8xf32, #tpu.memory_space<vmem>>, vector<1x10x8xf32>
    %3 = vector.shape_cast %2 : vector<1x10x8xf32> to vector<10x8xf32>
    %c1_i32 = arith.constant 1 : i32
    %4 = arith.addi %0, %c1_i32 : i32
    %c0_1 = arith.constant 0 : index
    %5 = arith.index_cast %4 : i32 to index
    %c0_2 = arith.constant 0 : index
    %6 = vector.load %arg2[%c0_1, %5, %c0_2] : memref<1x11x8xf32, #tpu.memory_space<vmem>>, vector<1x10x8xf32>
    %7 = vector.shape_cast %6 : vector<1x10x8xf32> to vector<10x8xf32>
    %c0_3 = arith.constant 0 : index
    %c0_4 = arith.constant 0 : index
    %8 = vector.load %arg3[%c0_3, %c0_4] : memref<8x8xf32, #tpu.memory_space<vmem>>, vector<8x8xf32>
    %cst = arith.constant dense<0.000000e+00> : vector<8x10xf32>
    %9 = tpu.matmul %8, %3, %cst {dimension_numbers = #tpu.dot_dimension_numbers<[1], [1], [0], [0], [0, 0, 1, 0], [], []>} : vector<8x8xf32>, vector<10x8xf32>, vector<8x10xf32> -> vector<8x10xf32>
    %c0_5 = arith.constant 0 : index
    %c0_6 = arith.constant 0 : index
    %10 = vector.load %arg4[%c0_5, %c0_6] : memref<8x8xf32, #tpu.memory_space<vmem>>, vector<8x8xf32>
    %cst_7 = arith.constant dense<0.000000e+00> : vector<8x10xf32>
    %11 = tpu.matmul %10, %7, %cst_7 {dimension_numbers = #tpu.dot_dimension_numbers<[1], [1], [0], [0], [0, 0, 1, 0], [], []>} : vector<8x8xf32>, vector<10x8xf32>, vector<8x10xf32> -> vector<8x10xf32>
    %12 = arith.addf %9, %11 : vector<8x10xf32>
    %c0_8 = arith.constant 0 : index
    %c0_9 = arith.constant 0 : index
    %c0_10 = arith.constant 0 : index
    %13 = vector.load %arg5[%c0_8, %c0_9, %c0_10] : memref<1x8x10xf32, #tpu.memory_space<vmem>>, vector<1x8x10xf32>
    %14 = vector.shape_cast %13 : vector<1x8x10xf32> to vector<8x10xf32>
    %15 = vector.shape_cast %12 : vector<8x10xf32> to vector<1x8x10xf32>
    tpu.vector_store %arg5[%c0_8, %c0_9, %c0_10], %15 {strides = array<i32>} : memref<1x8x10xf32, #tpu.memory_space<vmem>>, vector<1x8x10xf32>,
    return
  }
  func.func @transform_0(%arg0: i32, %arg1: i32) -> (i32, i32, i32) {
    %c0_i32 = arith.constant 0 : i32
    %c0_i32_0 = arith.constant 0 : i32
    %c0_i32_1 = arith.constant 0 : i32
    return %arg0, %c0_i32, %c0_i32_0 : i32, i32, i32
  }
  func.func @transform_1(%arg0: i32, %arg1: i32) -> (i32, i32) {
    %c0_i32 = arith.constant 0 : i32
    %c0_i32_0 = arith.constant 0 : i32
    %c0_i32_1 = arith.constant 0 : i32
    return %c0_i32, %c0_i32_0 : i32, i32
  }
  func.func @transform_2(%arg0: i32, %arg1: i32) -> (i32, i32) {
    %c0_i32 = arith.constant 0 : i32
    %c0_i32_0 = arith.constant 0 : i32
    %c0_i32_1 = arith.constant 0 : i32
    return %c0_i32, %c0_i32_0 : i32, i32
  }
  func.func @transform_3(%arg0: i32, %arg1: i32) -> (i32, i32, i32) {
    %c0_i32 = arith.constant 0 : i32
    %c0_i32_0 = arith.constant 0 : i32
    return %arg0, %c0_i32, %arg1 : i32, i32, i32
  }
}

</mosaic_0001>

<bundles_post_ra>
// kernel: tpu_custom_call.1
= control target key start
LH: loop header
LB: loop body
LE: loop exit
PB: predicated region body
PF: predicated region fallthrough
CT: control target
= control target key end

     0   :  { %8 = vsyncpa [#allocation3], 0  ;;  %s776_s0 = inlined_call_operand.vmem [shape: f32[8,11,8], index: 0, kind: input, shape index: {}]   ;;  %s777_s1 = inlined_call_operand.vmem [shape: f32[8,8], index: 1, kind: input, shape index: {}]   ;;  %s778_s2 = inlined_call_operand.vmem [shape: f32[8,8], index: 2, kind: input, shape index: {}]   ;;  %s779_s3 = inlined_call_operand.hbm [shape: f32[8,8,10], index: 3, kind: output, shape index: {}]  }
   0x1   :  { %10 = vsyncpa [#allocation3 + $0x1], 0  ;;  %s654_s12 = smov 0   ;;  %s656_s13 = smov 0  }
   0x2   :  { %s658_s14 = smov 0   ;;  %s660_s15 = smov 0  }
   0x3   :  { %s662_s16 = smov 0   ;;  %s664_s17 = smov 0  }
   0x4 LB: > { %s442_s18 = sadd.s32 4294967295, %s628_s17   ;;  %s443_s19 = sadd.s32 4294967294, %s628_s17   ;;  %s628_s17 = sphi %s664_s17, %s16_s17   ;;  %s624_s16 = sphi %s662_s16, %s786_s16   ;;  %s620_s15 = sphi %s660_s15, %s785_s15   ;;  %s616_s14 = sphi %s658_s14, %s784_s14   ;;  %s612_s13 = sphi %s656_s13, %s783_s13   ;;  %s608_s12 = sphi %s654_s12, %s782_s12  }
   0x5   : > { %s28_s20 = sadd.s32 1, %s624_s16  ;;  %s105_s21 = sadd.s32 1, %s616_s14 }
   0x6   : > { %p30_p0 = scmp.ge.s32.totalorder %s28_s20, 8  ;;  %p115_p1 = scmp.ne.s32.totalorder %s616_s14, %s612_s13 }
   0x7   : > { %p116_p2 = scmp.eq.s32.totalorder %s442_s18, 7  ;;  %p121_p3 = scmp.ne.s32.totalorder %s612_s13, %s608_s12 }
   0x8   : > { %s788_s20 = smov (%p30_p0, %s28_s20), 0  ;;  %p122_p5 = scmp.eq.s32.totalorder %s443_s19, 7 }
   0x9   : > { %p694_p4 = por %p116_p2, %p115_p1  ;;  %s100_s23 = ssub.s32 %s624_s16, %s788_s20 }
   0xa   : > { %p446_p6 = scmp.ge.s32.totalorder %s628_s17, 1  ;;  %p103_p7 = scmp.eq.s32.totalorder %s100_s23, 0 }
   0xb   : > { %p701_p8 = por %p122_p5, %p121_p3  ;;  %p154_p9 = scmp.lt.s32.totalorder %s628_s17, 9 }
   0xc   : > { %s707_s25 = scalar_select %p103_p7, %s616_s14, %s105_s21  }
   0xd   : > { %p155_p10 = pnand %p446_p6, %p154_p9 }
   0xe   : > { %p178_p11 = scmp.lt.s32.totalorder (!%p155_p10), %s620_s15, 7  ;;  %v630_v0 = vmov (!%p155_p10), 0.0|0.0   ;;  %vm193_vm0 = vcmask (!%p155_p10), 64512   ;;  %vm631_vm1 = vmmov (!%p155_p10), 0   ;;  %v632_v1 = vmov (!%p155_p10), 0.0   ;;  %v192_v8 = vld [vmem:[%s778_s2] sm:$0xff] (!%p155_p10) }
   0xf   : > { %158 = sbr.rel (%p155_p10) target bundleno = 265 (0x109), region = 32  ;;  %483 = vmatprep.subr.bf16.mxu1 (!%p155_p10), %v630_v0  ;;  %487 = vmatprep.subr.bf16.mxu0 (!%p155_p10), %v630_v0  ;;  %vm485_vm2 = vmpackc.low (!%p155_p10), %vm193_vm0, %vm193_vm0  ;;  %v191_v9 = vld [vmem:[%s777_s1] sm:$0xff] (!%p155_p10)  ;;  %s175_s8 = sand.u32 (!%p155_p10), 1, %s612_s13   ;;  %vm352_vm3 = vcmask (!%p155_p10), 80896  }
  0x10   : > { %473 = vmatprep.mubr.msk.f32.mxu1 (!%p155_p10), %vm631_vm1, %v632_v1  ;;  %480 = vmatprep.mubr.msk.f32.mxu0 (!%p155_p10), %vm631_vm1, %v632_v1  ;;  %s447_s9 = sshll.u32 (!%p155_p10), %s175_s8, 3  ;;  %s459_s10 = sshll.u32 (!%p155_p10), %s620_s15, 7 }
  0x11   : > { %s177_s11 = scalar_lea.vmem (!%p155_p10), [#allocation2], %s447_s9  ;;  %s729_s23 = scalar_lea.hbm (!%p155_p10), %s779_s3, %s459_s10 }
  0x12   : > { %s369_s18 = sshll.u32 (!%p155_p10), %s177_s11, 4  ;;  %s731_s18 = int_to_ptr.vmem [resolvable:$true] %s369_s18 }
  0x16   : > { %s179_s26 = scalar_select %p178_p11, %s620_s15, 7 }
  0x17   : > { %s355_s15 = scalar_lea.sflag [#allocation3], %s175_s8 }
  0x18   : > { %s462_s27 = sshll.u32 %s179_s26, 4  ;;  %s550_s26 = scalar_lea.vmem %s731_s18, 128 }
  0x19   : > { %s182_s30 = scalar_lea.vmem %s776_s0, %s462_s27  ;;  %p551_p12 = scmp.ne.s32.totalorder %s731_s18, %s550_s26 }
  0x1a   : > { %v450_v2 = vld [vmem:[%s182_s30 + $0x1] sm:$0xff]  ;;  %v451_v3 = vld [vmem:[%s182_s30 + $0x9] sm:$0x3]  ;;  %s633_s27 = smov [#allocation2]  }
  0x1b   : > { %v185_v4 = vld [vmem:[%s182_s30] sm:$0xff]  ;;  %v484_v5 = vpack.c.bf16 %v451_v3, %v450_v2  ;;  %v186_v6 = vld [vmem:[%s182_s30 + $0x8] sm:$0x3]  ;;  %p552_p13 = pnand %p551_p12, %p694_p4  ;;  %s554_s28 = sshll.u32 %s633_s27, 4  ;;  %s555_s28 = int_to_ptr.vmem [resolvable:$false] %s554_s28 }
  0x1c   : > { %v488_v7 = vpack.c.bf16 %v186_v6, %v185_v4  ;;  %s556_s29 = scalar_lea.vmem %s555_s28, 256  ;;  %p557_p1 = scmp.lt.s32.totalorder %s731_s18, %s555_s28 }
  0x1d   : > { %486 = vmatpush3.bf16.xpose.msk.msra.mxu1 %vm485_vm2, %v484_v5  ;;  %p553_p0 = pneg %p552_p13  ;;  %p558_p2 = scmp.lt.s32.totalorder %s556_s29, %s550_s26 }
  0x1e   : > { %490 = vmatpush3.bf16.xpose.msk.msra.mxu0 %vm485_vm2, %v488_v7 }
  0x1f   : > { %p559_p3 = por %p558_p2, %p557_p1 }
  0x21   : > { %p560_p5 = pnand %p559_p3, %p553_p0 }
  0x24   : > { %474 = vmatmul.mubr.msk.f32.vlgmr.msra.gmra.mrb[0].mxu1 %vm193_vm0, %v192_v8 }
  0x25   : > { %481 = vmatmul.mubr.msk.f32.vlgmr.msra.gmra.mrb[0].mxu0 %vm193_vm0, %v191_v9 }
  0xf7   : > { %v269_v10 = vpop.f32.mrb[0].mxu1 }
  0xf8   : > { %v348_v11 = vpop.f32.mrb[0].mxu0  ;;  %v475_v12 = vpop.f32.mrb[1].mxu1 }
  0xf9   : > { %v349_v13 = vadd.f32 %v348_v11, %v269_v10  ;;  %v482_v14 = vpop.f32.mrb[1].mxu0 }
  0xfb   : > { %353 = vst.msk [vmem:[%s177_s11] sm:$0xff] %vm352_vm3, %v349_v13 }
  0xfc   : > { %563 = shalt.err (!%p560_p5)
}
  0xfd   : > { %s564_s30 = scalar_lea.hbm %s729_s23, 128  ;;  %s568_s6 = scalar_lea.hbm %s779_s3, 1024 }
  0xfe   : > { %p565_p6 = scmp.ne.s32.totalorder %s729_s23, %s564_s30  ;;  %p569_p10 = scmp.lt.u32.totalorder %s729_s23, %s779_s3 }
  0xff   : > { %p570_p11 = scmp.lt.u32.totalorder %s568_s6, %s564_s30  ;;  %p572_p13 = scmp.lt.u32.totalorder %s564_s30, %s729_s23 }
 0x100   : > { %p566_p7 = pnand %p565_p6, %p694_p4 }
 0x101   : > { %p571_p12 = por %p570_p11, %p569_p10 }
 0x102   : > { %p567_p9 = pneg %p566_p7 }
 0x103   : > { %p573_p0 = por %p572_p13, %p571_p12 }
 0x105   : > { %p574_p1 = pnand %p573_p0, %p567_p9 }
 0x107   : > { %577 = shalt.err (!%p574_p1)
}
 0x108   : > { %492 = dma.vmem_to_hbm [thread:$0]  (%p694_p4), %s731_s18, 128, %s729_s23, %s355_s15  }
 0x109 PF: > { %p498_p2 = scmp.ge.s32.totalorder %s628_s17, 2  ;;  %s381_s9 = sand.u32 1, %s608_s12  }
 0x10a   : > { %s382_s10 = scalar_lea.sflag [#allocation3], %s381_s9 }
 0x10b   : > { %p495_p3 = pnand %p498_p2, %p701_p8 }
 0x10d   : > { %603 = dma.done.wait (!%p495_p3), %s382_s10, 128  }
 0x10e   : > { %605 = vsyncadd (!%p495_p3), %s382_s10, 4294967168  ;;  %s16_s17 = sadd.s32 1, %s628_s17   ;;  %s782_s12 = smov %s612_s13 }
 0x10f   : > { %p13_p5 = scmp.ge.s32.totalorder %s16_s17, 10   ;;  %s783_s13 = smov %s616_s14 }
 0x110   : > { %s784_s14 = smov %s707_s25  ;;  %s785_s15 = smov %s624_s16 }
 0x111   : > { %s786_s16 = smov %s788_s20  ;;  %15 = sbr.rel (!%p13_p5) target bundleno = 4 (0x4), region = 69 }
 0x118   :  { %387 = vsyncpa [#allocation3], 1 }
 0x119   :  { %389 = vsyncpa [#allocation3 + $0x1], 1 }

// kernel: tpu_custom_call.1
= control target key start
LH: loop header
LB: loop body
LE: loop exit
PB: predicated region body
PF: predicated region fallthrough
CT: control target
= control target key end

     0   :  { %8 = vsyncpa [#allocation3], 0  ;;  %s776_s0 = inlined_call_operand.vmem [shape: f32[8,11,8], index: 0, kind: input, shape index: {}]   ;;  %s777_s1 = inlined_call_operand.vmem [shape: f32[8,8], index: 1, kind: input, shape index: {}]   ;;  %s778_s2 = inlined_call_operand.vmem [shape: f32[8,8], index: 2, kind: input, shape index: {}]   ;;  %s779_s3 = inlined_call_operand.hbm [shape: f32[8,8,10], index: 3, kind: output, shape index: {}]  }
   0x1   :  { %10 = vsyncpa [#allocation3 + $0x1], 0  ;;  %s654_s12 = smov 0   ;;  %s656_s13 = smov 0  }
   0x2   :  { %s658_s14 = smov 0   ;;  %s660_s15 = smov 0  }
   0x3   :  { %s662_s16 = smov 0   ;;  %s664_s17 = smov 0  }
   0x4 LB: > { %s442_s18 = sadd.s32 4294967295, %s628_s17   ;;  %s443_s19 = sadd.s32 4294967294, %s628_s17   ;;  %s628_s17 = sphi %s664_s17, %s16_s17   ;;  %s624_s16 = sphi %s662_s16, %s786_s16   ;;  %s620_s15 = sphi %s660_s15, %s785_s15   ;;  %s616_s14 = sphi %s658_s14, %s784_s14   ;;  %s612_s13 = sphi %s656_s13, %s783_s13   ;;  %s608_s12 = sphi %s654_s12, %s782_s12  }
   0x5   : > { %s28_s20 = sadd.s32 1, %s624_s16  ;;  %s105_s21 = sadd.s32 1, %s616_s14 }
   0x6   : > { %p30_p0 = scmp.ge.s32.totalorder %s28_s20, 8  ;;  %p115_p1 = scmp.ne.s32.totalorder %s616_s14, %s612_s13 }
   0x7   : > { %p116_p2 = scmp.eq.s32.totalorder %s442_s18, 7  ;;  %p121_p3 = scmp.ne.s32.totalorder %s612_s13, %s608_s12 }
   0x8   : > { %s788_s20 = smov (%p30_p0, %s28_s20), 0  ;;  %p122_p5 = scmp.eq.s32.totalorder %s443_s19, 7 }
   0x9   : > { %p694_p4 = por %p116_p2, %p115_p1  ;;  %s100_s23 = ssub.s32 %s624_s16, %s788_s20 }
   0xa   : > { %p446_p6 = scmp.ge.s32.totalorder %s628_s17, 1  ;;  %p103_p7 = scmp.eq.s32.totalorder %s100_s23, 0 }
   0xb   : > { %p701_p8 = por %p122_p5, %p121_p3  ;;  %p154_p9 = scmp.lt.s32.totalorder %s628_s17, 9 }
   0xc   : > { %s707_s25 = scalar_select %p103_p7, %s616_s14, %s105_s21  }
   0xd   : > { %p155_p10 = pnand %p446_p6, %p154_p9 }
   0xe   : > { %p178_p11 = scmp.lt.s32.totalorder (!%p155_p10), %s620_s15, 7  ;;  %v630_v0 = vmov (!%p155_p10), 0.0|0.0   ;;  %vm193_vm0 = vcmask (!%p155_p10), 64512   ;;  %vm631_vm1 = vmmov (!%p155_p10), 0   ;;  %v632_v1 = vmov (!%p155_p10), 0.0   ;;  %v192_v8 = vld [vmem:[%s778_s2] sm:$0xff] (!%p155_p10) }
   0xf   : > { %158 = sbr.rel (%p155_p10) target bundleno = 265 (0x109), region = 32  ;;  %483 = vmatprep.subr.bf16.mxu1 (!%p155_p10), %v630_v0  ;;  %487 = vmatprep.subr.bf16.mxu0 (!%p155_p10), %v630_v0  ;;  %vm485_vm2 = vmpackc.low (!%p155_p10), %vm193_vm0, %vm193_vm0  ;;  %v191_v9 = vld [vmem:[%s777_s1] sm:$0xff] (!%p155_p10)  ;;  %s175_s8 = sand.u32 (!%p155_p10), 1, %s612_s13   ;;  %vm352_vm3 = vcmask (!%p155_p10), 80896  }
  0x10   : > { %473 = vmatprep.mubr.msk.f32.mxu1 (!%p155_p10), %vm631_vm1, %v632_v1  ;;  %480 = vmatprep.mubr.msk.f32.mxu0 (!%p155_p10), %vm631_vm1, %v632_v1  ;;  %s447_s9 = sshll.u32 (!%p155_p10), %s175_s8, 3  ;;  %s459_s10 = sshll.u32 (!%p155_p10), %s620_s15, 7 }
  0x11   : > { %s177_s11 = scalar_lea.vmem (!%p155_p10), [#allocation2], %s447_s9  ;;  %s729_s23 = scalar_lea.hbm (!%p155_p10), %s779_s3, %s459_s10 }
  0x12   : > { %s369_s18 = sshll.u32 (!%p155_p10), %s177_s11, 4  ;;  %s731_s18 = int_to_ptr.vmem [resolvable:$true] %s369_s18 }
  0x16   : > { %s179_s26 = scalar_select %p178_p11, %s620_s15, 7 }
  0x17   : > { %s355_s15 = scalar_lea.sflag [#allocation3], %s175_s8 }
  0x18   : > { %s462_s27 = sshll.u32 %s179_s26, 4  ;;  %s550_s26 = scalar_lea.vmem %s731_s18, 128 }
  0x19   : > { %s182_s30 = scalar_lea.vmem %s776_s0, %s462_s27  ;;  %p551_p12 = scmp.ne.s32.totalorder %s731_s18, %s550_s26 }
  0x1a   : > { %v450_v2 = vld [vmem:[%s182_s30 + $0x1] sm:$0xff]  ;;  %v451_v3 = vld [vmem:[%s182_s30 + $0x9] sm:$0x3]  ;;  %s633_s27 = smov [#allocation2]  }
  0x1b   : > { %v185_v4 = vld [vmem:[%s182_s30] sm:$0xff]  ;;  %v484_v5 = vpack.c.bf16 %v451_v3, %v450_v2  ;;  %v186_v6 = vld [vmem:[%s182_s30 + $0x8] sm:$0x3]  ;;  %p552_p13 = pnand %p551_p12, %p694_p4  ;;  %s554_s28 = sshll.u32 %s633_s27, 4  ;;  %s555_s28 = int_to_ptr.vmem [resolvable:$false] %s554_s28 }
  0x1c   : > { %v488_v7 = vpack.c.bf16 %v186_v6, %v185_v4  ;;  %s556_s29 = scalar_lea.vmem %s555_s28, 256  ;;  %p557_p1 = scmp.lt.s32.totalorder %s731_s18, %s555_s28 }
  0x1d   : > { %486 = vmatpush3.bf16.xpose.msk.msra.mxu1 %vm485_vm2, %v484_v5  ;;  %p553_p0 = pneg %p552_p13  ;;  %p558_p2 = scmp.lt.s32.totalorder %s556_s29, %s550_s26 }
  0x1e   : > { %490 = vmatpush3.bf16.xpose.msk.msra.mxu0 %vm485_vm2, %v488_v7 }
  0x1f   : > { %p559_p3 = por %p558_p2, %p557_p1 }
  0x21   : > { %p560_p5 = pnand %p559_p3, %p553_p0 }
  0x24   : > { %474 = vmatmul.mubr.msk.f32.vlgmr.msra.gmra.mrb[0].mxu1 %vm193_vm0, %v192_v8 }
  0x25   : > { %481 = vmatmul.mubr.msk.f32.vlgmr.msra.gmra.mrb[0].mxu0 %vm193_vm0, %v191_v9 }
  0xf7   : > { %v269_v10 = vpop.f32.mrb[0].mxu1 }
  0xf8   : > { %v348_v11 = vpop.f32.mrb[0].mxu0  ;;  %v475_v12 = vpop.f32.mrb[1].mxu1 }
  0xf9   : > { %v349_v13 = vadd.f32 %v348_v11, %v269_v10  ;;  %v482_v14 = vpop.f32.mrb[1].mxu0 }
  0xfb   : > { %353 = vst.msk [vmem:[%s177_s11] sm:$0xff] %vm352_vm3, %v349_v13 }
  0xfc   : > { %563 = shalt.err (!%p560_p5)
}
  0xfd   : > { %s564_s30 = scalar_lea.hbm %s729_s23, 128  ;;  %s568_s6 = scalar_lea.hbm %s779_s3, 1024 }
  0xfe   : > { %p565_p6 = scmp.ne.s32.totalorder %s729_s23, %s564_s30  ;;  %p569_p10 = scmp.lt.u32.totalorder %s729_s23, %s779_s3 }
  0xff   : > { %p570_p11 = scmp.lt.u32.totalorder %s568_s6, %s564_s30  ;;  %p572_p13 = scmp.lt.u32.totalorder %s564_s30, %s729_s23 }
 0x100   : > { %p566_p7 = pnand %p565_p6, %p694_p4 }
 0x101   : > { %p571_p12 = por %p570_p11, %p569_p10 }
 0x102   : > { %p567_p9 = pneg %p566_p7 }
 0x103   : > { %p573_p0 = por %p572_p13, %p571_p12 }
 0x105   : > { %p574_p1 = pnand %p573_p0, %p567_p9 }
 0x107   : > { %577 = shalt.err (!%p574_p1)
}
 0x108   : > { %492 = dma.vmem_to_hbm [thread:$0]  (%p694_p4), %s731_s18, 128, %s729_s23, %s355_s15  }
 0x109 PF: > { %p498_p2 = scmp.ge.s32.totalorder %s628_s17, 2  ;;  %s381_s9 = sand.u32 1, %s608_s12  }
 0x10a   : > { %s382_s10 = scalar_lea.sflag [#allocation3], %s381_s9 }
 0x10b   : > { %p495_p3 = pnand %p498_p2, %p701_p8 }
 0x10d   : > { %603 = dma.done.wait (!%p495_p3), %s382_s10, 128  }
 0x10e   : > { %605 = vsyncadd (!%p495_p3), %s382_s10, 4294967168  ;;  %s16_s17 = sadd.s32 1, %s628_s17   ;;  %s782_s12 = smov %s612_s13 }
 0x10f   : > { %p13_p5 = scmp.ge.s32.totalorder %s16_s17, 10   ;;  %s783_s13 = smov %s616_s14 }
 0x110   : > { %s784_s14 = smov %s707_s25  ;;  %s785_s15 = smov %s624_s16 }
 0x111   : > { %s786_s16 = smov %s788_s20  ;;  %15 = sbr.rel (!%p13_p5) target bundleno = 4 (0x4), region = 69 }
 0x118   :  { %387 = vsyncpa [#allocation3], 1 }
 0x119   :  { %389 = vsyncpa [#allocation3 + $0x1], 1 }

</bundles_post_ra>
